<compile_context>
chip_gen: v7x
topology: tpu7x:2x2x1
jax: 0.10.0
libtpu: 0.0.40
codegen_flags: <defaults>
</compile_context>

<pallas_src>
import functools
import math

import jax
import jax.numpy as jnp
from jax.experimental import pallas as pl
from jax.experimental.pallas import tpu as pltpu

_SELU_ALPHA = 1.6732632423543772848170429916717
_SELU_SCALE = 1.0507009873554804934193349852946


def _selu(x):
    return _SELU_SCALE * jnp.where(x > 0, x, _SELU_ALPHA * (jnp.exp(x) - 1.0))


# ----------------------------- kernel body ----------------------------------


def _realnvp_kernel(x_ref,
                    c1w1, c1b1, c1w2, c1b2, c1w3, c1b3,
                    c2w1, c2b1, c2w2, c2b2, c2w3, c2b3,
                    out_ref, *, dlo):
    """One grid step: TB rows of x -> TB rows of z, entirely in VMEM."""
    x = x_ref[...].astype(jnp.float32)
    dhi = x.shape[1] - dlo
    lower = x[:, :dlo]          # only used by the cheap elementwise update
    upper = x[:, dlo:]

    def fused_net(v, w1, b1, w2, b2, w3, b3, split):
        # Fused t/s network: W2/W3 are block-diagonal so the two halves of
        # the hidden state never mix; one 3-matmul chain yields [t | s].
        h = _selu(jnp.dot(v, w1[...], preferred_element_type=jnp.float32) + b1[...])
        h = _selu(jnp.dot(h, w2[...], preferred_element_type=jnp.float32) + b2[...])
        o = jnp.dot(h, w3[...], preferred_element_type=jnp.float32) + b3[...]
        return o[:, :split], o[:, split:]

    # Coupling 1: c1w1 is zero-padded to (D, 2H) so this matmul consumes the
    # dense x tile directly (no sub-(8,128) lane slice feeding the MXU).
    t1, s1 = fused_net(x, c1w1, c1b1, c1w2, c1b2, c1w3, c1b3, dhi)
    upper_new = t1 + upper * jnp.exp(s1)

    # Coupling 2: upper' -> (t2, s2); lower' = t2 + lower * exp(s2)
    t2, s2 = fused_net(upper_new, c2w1, c2b1, c2w2, c2b2, c2w3, c2b3, dlo)
    lower_new = t2 + lower * jnp.exp(s2)

    # Single dense (TB, D) output block -> one dense writeback DMA per step
    # (no wrapper-side concat, no lane-sparse dlo/dhi-wide outputs).
    out_ref[:, :dlo] = lower_new.astype(out_ref.dtype)
    out_ref[:, dlo:] = upper_new.astype(out_ref.dtype)


# ----------------------------- weight packing --------------------------------


def _pack_ts(t_params, s_params, pad_in_to=None):
    """Fuse a t-net and an s-net into one (W1, b1, W2, b2, W3, b3) chain."""
    tw1, tb1, tw2, tb2, tw3, tb3 = t_params
    sw1, sb1, sw2, sb2, sw3, sb3 = s_params
    H = tw2.shape[0]
    dt = tw1.dtype
    # NOTE: the block-diagonal fusion is only "free" while 2H fits a single
    # MXU tile (<=128 lanes on v5e, <=256 on v6e/v7x).  Past that, half the
    # middle-matmul pushes multiply zero blocks and the nets should be split
    # back into two H-wide chains.
    z_hh = jnp.zeros((H, H), dt)
    w1 = jnp.concatenate([tw1, sw1], axis=1)                        # (in, 2H)
    if pad_in_to is not None and pad_in_to > w1.shape[0]:
        # Zero rows for the columns of x that this coupling ignores, so the
        # kernel can feed the dense x tile straight into the matmul.
        w1 = jnp.concatenate(
            [w1, jnp.zeros((pad_in_to - w1.shape[0], w1.shape[1]), dt)], axis=0)
    b1 = jnp.concatenate([tb1, sb1], axis=1)                        # (1, 2H)
    w2 = jnp.block([[tw2, z_hh], [z_hh, sw2]])                      # (2H, 2H)
    b2 = jnp.concatenate([tb2, sb2], axis=1)                        # (1, 2H)
    out_t, out_s = tw3.shape[1], sw3.shape[1]
    w3 = jnp.block([[tw3, jnp.zeros((H, out_s), dt)],
                    [jnp.zeros((H, out_t), dt), sw3]])              # (2H, ot+os)
    b3 = jnp.concatenate([tb3, sb3], axis=1)                        # (1, ot+os)
    return w1, b1, w2, b2, w3, b3


def pack_realnvp_params(params, dim):
    """Pack fused weights ONCE (hoisted out of the per-forward-call path)."""
    c1 = _pack_ts(params["t1"], params["s1"], pad_in_to=dim)   # lower -> (t1|s1)
    c2 = _pack_ts(params["t2"], params["s2"])                  # upper' -> (t2|s2)
    return tuple(c1) + tuple(c2)


# ----------------------------- host wrapper ----------------------------------


def _round_up(v, m):
    return (v + m - 1) // m * m


def _cdiv(a, b):
    return (a + b - 1) // b


def _pick_batch_tile(B, D, hidden2):
    """Pick TB so ~8 MiB of f32 activations live per grid step (mult of 8)."""
    bytes_per_row = 4 * (2 * D + 2 * hidden2)   # x + z + two (TB, 2H) hiddens
    tb_cap = max(8, min(32768, ((8 << 20) // bytes_per_row) // 8 * 8))
    if B <= tb_cap:
        if B >= 4096:
            # Keep >= 2 grid steps so the "parallel" batch axis can shard
            # across v7x's two TensorCores (no-op on single-TC v5e/v6e).
            return _round_up(_cdiv(B, 2), 8)
        return B
    steps = _cdiv(B, tb_cap)
    if steps % 2 == 1:
        steps += 1          # even step count -> balanced megacore split on v7x
    return _round_up(_cdiv(B, steps), 8)


def realnvp_forward(x, packed_weights):
    B, D = x.shape
    dlo = D // 2
    hidden2 = packed_weights[0].shape[1]        # fused hidden width = 2H

    TB = _pick_batch_tile(B, D, hidden2)
    grid = (_cdiv(B, TB),)
    # When B % TB != 0 the padded rows of the last block run exp()/SELU on
    # garbage data; those rows are discarded by Pallas, so any Inf/NaN in
    # them is benign.

    x_spec = pl.BlockSpec((TB, D), lambda i: (i, 0))
    # Constant index_map keeps the (tiny) fused weights resident in VMEM
    # across all grid steps.  (pipeline_mode=pl.Buffered(1) would halve their
    # VMEM footprint for large H; left at the default at these sizes.)
    w_specs = [pl.BlockSpec(w.shape, lambda i: (0, 0)) for w in packed_weights]
    out_spec = pl.BlockSpec((TB, D), lambda i: (i, 0))

    return pl.pallas_call(
        functools.partial(_realnvp_kernel, dlo=dlo),
        out_shape=jax.ShapeDtypeStruct((B, D), x.dtype),
        grid=grid,
        in_specs=[x_spec] + w_specs,
        out_specs=out_spec,
        compiler_params=pltpu.CompilerParams(
            dimension_semantics=("parallel",),
            # Generous headroom for the ~10 MiB worst-case working set while
            # staying under v7x's 64 MiB physical VMEM (v5e/v6e have 128 MiB).
            vmem_limit_bytes=48 * 1024 * 1024),
    )(x, *packed_weights)


# ----------------------------- params / reference ----------------------------


def _init_linear(key, in_dim, out_dim, dtype=jnp.float32):
    # PyTorch nn.Linear default init: U(-1/sqrt(in_dim), 1/sqrt(in_dim)).
    kw, kb = jax.random.split(key)
    bound = 1.0 / math.sqrt(in_dim)
    w = jax.random.uniform(kw, (in_dim, out_dim), dtype, -bound, bound)
    b = jax.random.uniform(kb, (1, out_dim), dtype, -bound, bound)
    return w, b


def init_realnvp_params(key, dim, hidden_dim=8):
    dlo = dim // 2
    dhi = dim - dlo
    sizes = {"t1": (dlo, dhi), "s1": (dlo, dhi),
             "t2": (dhi, dlo), "s2": (dhi, dlo)}
    params = {}
    keys = jax.random.split(key, 12)
    k = 0
    for name, (in_dim, out_dim) in sizes.items():
        w1, b1 = _init_linear(keys[k], in_dim, hidden_dim); k += 1
        w2, b2 = _init_linear(keys[k], hidden_dim, hidden_dim); k += 1
        w3, b3 = _init_linear(keys[k], hidden_dim, out_dim); k += 1
        params[name] = (w1, b1, w2, b2, w3, b3)
    return params


def _reference_forward(x, params):
    """Pure-JAX reference mirroring RealNVP.forward."""
    D = x.shape[1]
    dlo = D // 2
    lower, upper = x[:, :dlo], x[:, dlo:]

    def net(name, v):
        w1, b1, w2, b2, w3, b3 = params[name]
        h = _selu(v @ w1 + b1)
        h = _selu(h @ w2 + b2)
        return h @ w3 + b3

    upper = net("t1", lower) + upper * jnp.exp(net("s1", lower))
    lower = net("t2", upper) + lower * jnp.exp(net("s2", upper))
    return jnp.concatenate([lower, upper], axis=-1)


if __name__ == "__main__":
    B, D, H = 8, 8, 32  # batch, flow dimension, FCNN hidden dim

    key = jax.random.PRNGKey(0)
    kx, kp = jax.random.split(key)
    x = jax.random.normal(kx, (B, D), dtype=jnp.float32)
    params = init_realnvp_params(kp, D, hidden_dim=H)

    # Pack fused weights once; reuse across forward calls.
    packed = pack_realnvp_params(params, D)

    fwd = jax.jit(realnvp_forward)
    z = fwd(x, packed)
    z = jax.block_until_ready(z)

    z_ref = _reference_forward(x, params)
    assert z.shape == (B, D)
    assert jnp.allclose(z, z_ref, atol=1e-5, rtol=1e-5), "mismatch vs reference"

    print("KERNEL_OK")
</pallas_src>

<mosaic_0001>
module attributes {stable_mosaic.version = 11 : i64} {
  func.func @_realnvp_kernel(%arg0: i32, %arg1: memref<8x8xf32, #tpu.memory_space<vmem>>, %arg2: memref<8x64xf32, #tpu.memory_space<vmem>>, %arg3: memref<1x64xf32, #tpu.memory_space<vmem>>, %arg4: memref<64x64xf32, #tpu.memory_space<vmem>>, %arg5: memref<1x64xf32, #tpu.memory_space<vmem>>, %arg6: memref<64x8xf32, #tpu.memory_space<vmem>>, %arg7: memref<1x8xf32, #tpu.memory_space<vmem>>, %arg8: memref<4x64xf32, #tpu.memory_space<vmem>>, %arg9: memref<1x64xf32, #tpu.memory_space<vmem>>, %arg10: memref<64x64xf32, #tpu.memory_space<vmem>>, %arg11: memref<1x64xf32, #tpu.memory_space<vmem>>, %arg12: memref<64x8xf32, #tpu.memory_space<vmem>>, %arg13: memref<1x8xf32, #tpu.memory_space<vmem>>, %arg14: memref<8x8xf32, #tpu.memory_space<vmem>>) attributes {dimension_semantics = [#tpu.dimension_semantics<parallel>], iteration_bounds = array<i64: 1>, scalar_prefetch = 0 : i64, scratch_operands = 0 : i64, tpu.core_type = #tpu.core_type<tc>, window_params = [{transform_indices = @transform_0, window_bounds = array<i64: 8, 8>}, {pipeline_mode = #tpu.pipeline_mode<synchronous>, transform_indices = @transform_1, window_bounds = array<i64: 8, 64>}, {pipeline_mode = #tpu.pipeline_mode<synchronous>, transform_indices = @transform_2, window_bounds = array<i64: 1, 64>}, {pipeline_mode = #tpu.pipeline_mode<synchronous>, transform_indices = @transform_3, window_bounds = array<i64: 64, 64>}, {pipeline_mode = #tpu.pipeline_mode<synchronous>, transform_indices = @transform_4, window_bounds = array<i64: 1, 64>}, {pipeline_mode = #tpu.pipeline_mode<synchronous>, transform_indices = @transform_5, window_bounds = array<i64: 64, 8>}, {pipeline_mode = #tpu.pipeline_mode<synchronous>, transform_indices = @transform_6, window_bounds = array<i64: 1, 8>}, {pipeline_mode = #tpu.pipeline_mode<synchronous>, transform_indices = @transform_7, window_bounds = array<i64: 4, 64>}, {pipeline_mode = #tpu.pipeline_mode<synchronous>, transform_indices = @transform_8, window_bounds = array<i64: 1, 64>}, {pipeline_mode = #tpu.pipeline_mode<synchronous>, transform_indices = @transform_9, window_bounds = array<i64: 64, 64>}, {pipeline_mode = #tpu.pipeline_mode<synchronous>, transform_indices = @transform_10, window_bounds = array<i64: 1, 64>}, {pipeline_mode = #tpu.pipeline_mode<synchronous>, transform_indices = @transform_11, window_bounds = array<i64: 64, 8>}, {pipeline_mode = #tpu.pipeline_mode<synchronous>, transform_indices = @transform_12, window_bounds = array<i64: 1, 8>}, {transform_indices = @transform_13, window_bounds = array<i64: 8, 8>}]} {
    %c0 = arith.constant 0 : index
    %c0_0 = arith.constant 0 : index
    %0 = vector.load %arg1[%c0, %c0_0] : memref<8x8xf32, #tpu.memory_space<vmem>>, vector<8x8xf32>
    %1 = vector.extract_strided_slice %0 {offsets = [0, 0], sizes = [8, 4], strides = [1, 1]} : vector<8x8xf32> to vector<8x4xf32>
    %2 = vector.extract_strided_slice %0 {offsets = [0, 4], sizes = [8, 4], strides = [1, 1]} : vector<8x8xf32> to vector<8x4xf32>
    %c0_1 = arith.constant 0 : index
    %c0_2 = arith.constant 0 : index
    %3 = vector.load %arg2[%c0_1, %c0_2] : memref<8x64xf32, #tpu.memory_space<vmem>>, vector<8x64xf32>
    %cst = arith.constant dense<0.000000e+00> : vector<8x64xf32>
    %4 = tpu.matmul %0, %3, %cst {dimension_numbers = #tpu.dot_dimension_numbers<[1], [0], [0], [1], [0, 0, 1, 1], [], []>} : vector<8x8xf32>, vector<8x64xf32>, vector<8x64xf32> -> vector<8x64xf32>
    %c0_3 = arith.constant 0 : index
    %c0_4 = arith.constant 0 : index
    %5 = vector.load %arg3[%c0_3, %c0_4] : memref<1x64xf32, #tpu.memory_space<vmem>>, vector<1x64xf32>
    %6 = vector.broadcast %5 : vector<1x64xf32> to vector<8x64xf32>
    %7 = arith.addf %4, %6 : vector<8x64xf32>
    %cst_5 = arith.constant 0.000000e+00 : f32
    %8 = vector.broadcast %cst_5 : f32 to vector<8x64xf32>
    %9 = arith.cmpf ogt, %7, %8 : vector<8x64xf32>
    %10 = math.exp %7 : vector<8x64xf32>
    %cst_6 = arith.constant 1.000000e+00 : f32
    %11 = vector.broadcast %cst_6 : f32 to vector<8x64xf32>
    %12 = arith.subf %10, %11 : vector<8x64xf32>
    %cst_7 = arith.constant 1.67326319 : f32
    %13 = vector.broadcast %cst_7 : f32 to vector<8x64xf32>
    %14 = arith.mulf %13, %12 : vector<8x64xf32>
    %15 = arith.select %9, %7, %14 : vector<8x64xi1>, vector<8x64xf32>
    %cst_8 = arith.constant 1.05070102 : f32
    %16 = vector.broadcast %cst_8 : f32 to vector<8x64xf32>
    %17 = arith.mulf %16, %15 : vector<8x64xf32>
    %c0_9 = arith.constant 0 : index
    %c0_10 = arith.constant 0 : index
    %18 = vector.load %arg4[%c0_9, %c0_10] : memref<64x64xf32, #tpu.memory_space<vmem>>, vector<64x64xf32>
    %cst_11 = arith.constant dense<0.000000e+00> : vector<8x64xf32>
    %19 = tpu.matmul %17, %18, %cst_11 {dimension_numbers = #tpu.dot_dimension_numbers<[1], [0], [0], [1], [0, 0, 1, 1], [], []>} : vector<8x64xf32>, vector<64x64xf32>, vector<8x64xf32> -> vector<8x64xf32>
    %c0_12 = arith.constant 0 : index
    %c0_13 = arith.constant 0 : index
    %20 = vector.load %arg5[%c0_12, %c0_13] : memref<1x64xf32, #tpu.memory_space<vmem>>, vector<1x64xf32>
    %21 = vector.broadcast %20 : vector<1x64xf32> to vector<8x64xf32>
    %22 = arith.addf %19, %21 : vector<8x64xf32>
    %cst_14 = arith.constant 0.000000e+00 : f32
    %23 = vector.broadcast %cst_14 : f32 to vector<8x64xf32>
    %24 = arith.cmpf ogt, %22, %23 : vector<8x64xf32>
    %25 = math.exp %22 : vector<8x64xf32>
    %cst_15 = arith.constant 1.000000e+00 : f32
    %26 = vector.broadcast %cst_15 : f32 to vector<8x64xf32>
    %27 = arith.subf %25, %26 : vector<8x64xf32>
    %cst_16 = arith.constant 1.67326319 : f32
    %28 = vector.broadcast %cst_16 : f32 to vector<8x64xf32>
    %29 = arith.mulf %28, %27 : vector<8x64xf32>
    %30 = arith.select %24, %22, %29 : vector<8x64xi1>, vector<8x64xf32>
    %cst_17 = arith.constant 1.05070102 : f32
    %31 = vector.broadcast %cst_17 : f32 to vector<8x64xf32>
    %32 = arith.mulf %31, %30 : vector<8x64xf32>
    %c0_18 = arith.constant 0 : index
    %c0_19 = arith.constant 0 : index
    %33 = vector.load %arg6[%c0_18, %c0_19] : memref<64x8xf32, #tpu.memory_space<vmem>>, vector<64x8xf32>
    %cst_20 = arith.constant dense<0.000000e+00> : vector<8x8xf32>
    %34 = tpu.matmul %32, %33, %cst_20 {dimension_numbers = #tpu.dot_dimension_numbers<[1], [0], [0], [1], [0, 0, 1, 1], [], []>} : vector<8x64xf32>, vector<64x8xf32>, vector<8x8xf32> -> vector<8x8xf32>
    %c0_21 = arith.constant 0 : index
    %c0_22 = arith.constant 0 : index
    %35 = vector.load %arg7[%c0_21, %c0_22] : memref<1x8xf32, #tpu.memory_space<vmem>>, vector<1x8xf32>
    %36 = vector.broadcast %35 : vector<1x8xf32> to vector<8x8xf32>
    %37 = arith.addf %34, %36 : vector<8x8xf32>
    %38 = vector.extract_strided_slice %37 {offsets = [0, 0], sizes = [8, 4], strides = [1, 1]} : vector<8x8xf32> to vector<8x4xf32>
    %39 = vector.extract_strided_slice %37 {offsets = [0, 4], sizes = [8, 4], strides = [1, 1]} : vector<8x8xf32> to vector<8x4xf32>
    %40 = math.exp %39 : vector<8x4xf32>
    %41 = arith.mulf %2, %40 : vector<8x4xf32>
    %42 = arith.addf %38, %41 : vector<8x4xf32>
    %c0_23 = arith.constant 0 : index
    %c0_24 = arith.constant 0 : index
    %43 = vector.load %arg8[%c0_23, %c0_24] : memref<4x64xf32, #tpu.memory_space<vmem>>, vector<4x64xf32>
    %cst_25 = arith.constant dense<0.000000e+00> : vector<8x64xf32>
    %44 = tpu.matmul %42, %43, %cst_25 {dimension_numbers = #tpu.dot_dimension_numbers<[1], [0], [0], [1], [0, 0, 1, 1], [], []>} : vector<8x4xf32>, vector<4x64xf32>, vector<8x64xf32> -> vector<8x64xf32>
    %c0_26 = arith.constant 0 : index
    %c0_27 = arith.constant 0 : index
    %45 = vector.load %arg9[%c0_26, %c0_27] : memref<1x64xf32, #tpu.memory_space<vmem>>, vector<1x64xf32>
    %46 = vector.broadcast %45 : vector<1x64xf32> to vector<8x64xf32>
    %47 = arith.addf %44, %46 : vector<8x64xf32>
    %cst_28 = arith.constant 0.000000e+00 : f32
    %48 = vector.broadcast %cst_28 : f32 to vector<8x64xf32>
    %49 = arith.cmpf ogt, %47, %48 : vector<8x64xf32>
    %50 = math.exp %47 : vector<8x64xf32>
    %cst_29 = arith.constant 1.000000e+00 : f32
    %51 = vector.broadcast %cst_29 : f32 to vector<8x64xf32>
    %52 = arith.subf %50, %51 : vector<8x64xf32>
    %cst_30 = arith.constant 1.67326319 : f32
    %53 = vector.broadcast %cst_30 : f32 to vector<8x64xf32>
    %54 = arith.mulf %53, %52 : vector<8x64xf32>
    %55 = arith.select %49, %47, %54 : vector<8x64xi1>, vector<8x64xf32>
    %cst_31 = arith.constant 1.05070102 : f32
    %56 = vector.broadcast %cst_31 : f32 to vector<8x64xf32>
    %57 = arith.mulf %56, %55 : vector<8x64xf32>
    %c0_32 = arith.constant 0 : index
    %c0_33 = arith.constant 0 : index
    %58 = vector.load %arg10[%c0_32, %c0_33] : memref<64x64xf32, #tpu.memory_space<vmem>>, vector<64x64xf32>
    %cst_34 = arith.constant dense<0.000000e+00> : vector<8x64xf32>
    %59 = tpu.matmul %57, %58, %cst_34 {dimension_numbers = #tpu.dot_dimension_numbers<[1], [0], [0], [1], [0, 0, 1, 1], [], []>} : vector<8x64xf32>, vector<64x64xf32>, vector<8x64xf32> -> vector<8x64xf32>
    %c0_35 = arith.constant 0 : index
    %c0_36 = arith.constant 0 : index
    %60 = vector.load %arg11[%c0_35, %c0_36] : memref<1x64xf32, #tpu.memory_space<vmem>>, vector<1x64xf32>
    %61 = vector.broadcast %60 : vector<1x64xf32> to vector<8x64xf32>
    %62 = arith.addf %59, %61 : vector<8x64xf32>
    %cst_37 = arith.constant 0.000000e+00 : f32
    %63 = vector.broadcast %cst_37 : f32 to vector<8x64xf32>
    %64 = arith.cmpf ogt, %62, %63 : vector<8x64xf32>
    %65 = math.exp %62 : vector<8x64xf32>
    %cst_38 = arith.constant 1.000000e+00 : f32
    %66 = vector.broadcast %cst_38 : f32 to vector<8x64xf32>
    %67 = arith.subf %65, %66 : vector<8x64xf32>
    %cst_39 = arith.constant 1.67326319 : f32
    %68 = vector.broadcast %cst_39 : f32 to vector<8x64xf32>
    %69 = arith.mulf %68, %67 : vector<8x64xf32>
    %70 = arith.select %64, %62, %69 : vector<8x64xi1>, vector<8x64xf32>
    %cst_40 = arith.constant 1.05070102 : f32
    %71 = vector.broadcast %cst_40 : f32 to vector<8x64xf32>
    %72 = arith.mulf %71, %70 : vector<8x64xf32>
    %c0_41 = arith.constant 0 : index
    %c0_42 = arith.constant 0 : index
    %73 = vector.load %arg12[%c0_41, %c0_42] : memref<64x8xf32, #tpu.memory_space<vmem>>, vector<64x8xf32>
    %cst_43 = arith.constant dense<0.000000e+00> : vector<8x8xf32>
    %74 = tpu.matmul %72, %73, %cst_43 {dimension_numbers = #tpu.dot_dimension_numbers<[1], [0], [0], [1], [0, 0, 1, 1], [], []>} : vector<8x64xf32>, vector<64x8xf32>, vector<8x8xf32> -> vector<8x8xf32>
    %c0_44 = arith.constant 0 : index
    %c0_45 = arith.constant 0 : index
    %75 = vector.load %arg13[%c0_44, %c0_45] : memref<1x8xf32, #tpu.memory_space<vmem>>, vector<1x8xf32>
    %76 = vector.broadcast %75 : vector<1x8xf32> to vector<8x8xf32>
    %77 = arith.addf %74, %76 : vector<8x8xf32>
    %78 = vector.extract_strided_slice %77 {offsets = [0, 0], sizes = [8, 4], strides = [1, 1]} : vector<8x8xf32> to vector<8x4xf32>
    %79 = vector.extract_strided_slice %77 {offsets = [0, 4], sizes = [8, 4], strides = [1, 1]} : vector<8x8xf32> to vector<8x4xf32>
    %80 = math.exp %79 : vector<8x4xf32>
    %81 = arith.mulf %1, %80 : vector<8x4xf32>
    %82 = arith.addf %78, %81 : vector<8x4xf32>
    %c0_46 = arith.constant 0 : index
    %c0_47 = arith.constant 0 : index
    %83 = vector.load %arg14[%c0_46, %c0_47] : memref<8x8xf32, #tpu.memory_space<vmem>>, vector<8x4xf32>
    tpu.vector_store %arg14[%c0_46, %c0_47], %82 {strides = array<i32>} : memref<8x8xf32, #tpu.memory_space<vmem>>, vector<8x4xf32>,
    %c0_48 = arith.constant 0 : index
    %c4 = arith.constant 4 : index
    %84 = vector.load %arg14[%c0_48, %c4] : memref<8x8xf32, #tpu.memory_space<vmem>>, vector<8x4xf32>
    tpu.vector_store %arg14[%c0_48, %c4], %42 {strides = array<i32>} : memref<8x8xf32, #tpu.memory_space<vmem>>, vector<8x4xf32>,
    return
  }
  func.func @transform_0(%arg0: i32) -> (i32, i32) {
    %c0_i32 = arith.constant 0 : i32
    %c0_i32_0 = arith.constant 0 : i32
    return %arg0, %c0_i32 : i32, i32
  }
  func.func @transform_1(%arg0: i32) -> (i32, i32) {
    %c0_i32 = arith.constant 0 : i32
    %c0_i32_0 = arith.constant 0 : i32
    %c0_i32_1 = arith.constant 0 : i32
    return %c0_i32, %c0_i32_0 : i32, i32
  }
  func.func @transform_2(%arg0: i32) -> (i32, i32) {
    %c0_i32 = arith.constant 0 : i32
    %c0_i32_0 = arith.constant 0 : i32
    %c0_i32_1 = arith.constant 0 : i32
    return %c0_i32, %c0_i32_0 : i32, i32
  }
  func.func @transform_3(%arg0: i32) -> (i32, i32) {
    %c0_i32 = arith.constant 0 : i32
    %c0_i32_0 = arith.constant 0 : i32
    %c0_i32_1 = arith.constant 0 : i32
    return %c0_i32, %c0_i32_0 : i32, i32
  }
  func.func @transform_4(%arg0: i32) -> (i32, i32) {
    %c0_i32 = arith.constant 0 : i32
    %c0_i32_0 = arith.constant 0 : i32
    %c0_i32_1 = arith.constant 0 : i32
    return %c0_i32, %c0_i32_0 : i32, i32
  }
  func.func @transform_5(%arg0: i32) -> (i32, i32) {
    %c0_i32 = arith.constant 0 : i32
    %c0_i32_0 = arith.constant 0 : i32
    %c0_i32_1 = arith.constant 0 : i32
    return %c0_i32, %c0_i32_0 : i32, i32
  }
  func.func @transform_6(%arg0: i32) -> (i32, i32) {
    %c0_i32 = arith.constant 0 : i32
    %c0_i32_0 = arith.constant 0 : i32
    %c0_i32_1 = arith.constant 0 : i32
    return %c0_i32, %c0_i32_0 : i32, i32
  }
  func.func @transform_7(%arg0: i32) -> (i32, i32) {
    %c0_i32 = arith.constant 0 : i32
    %c0_i32_0 = arith.constant 0 : i32
    %c0_i32_1 = arith.constant 0 : i32
    return %c0_i32, %c0_i32_0 : i32, i32
  }
  func.func @transform_8(%arg0: i32) -> (i32, i32) {
    %c0_i32 = arith.constant 0 : i32
    %c0_i32_0 = arith.constant 0 : i32
    %c0_i32_1 = arith.constant 0 : i32
    return %c0_i32, %c0_i32_0 : i32, i32
  }
  func.func @transform_9(%arg0: i32) -> (i32, i32) {
    %c0_i32 = arith.constant 0 : i32
    %c0_i32_0 = arith.constant 0 : i32
    %c0_i32_1 = arith.constant 0 : i32
    return %c0_i32, %c0_i32_0 : i32, i32
  }
  func.func @transform_10(%arg0: i32) -> (i32, i32) {
    %c0_i32 = arith.constant 0 : i32
    %c0_i32_0 = arith.constant 0 : i32
    %c0_i32_1 = arith.constant 0 : i32
    return %c0_i32, %c0_i32_0 : i32, i32
  }
  func.func @transform_11(%arg0: i32) -> (i32, i32) {
    %c0_i32 = arith.constant 0 : i32
    %c0_i32_0 = arith.constant 0 : i32
    %c0_i32_1 = arith.constant 0 : i32
    return %c0_i32, %c0_i32_0 : i32, i32
  }
  func.func @transform_12(%arg0: i32) -> (i32, i32) {
    %c0_i32 = arith.constant 0 : i32
    %c0_i32_0 = arith.constant 0 : i32
    %c0_i32_1 = arith.constant 0 : i32
    return %c0_i32, %c0_i32_0 : i32, i32
  }
  func.func @transform_13(%arg0: i32) -> (i32, i32) {
    %c0_i32 = arith.constant 0 : i32
    %c0_i32_0 = arith.constant 0 : i32
    return %arg0, %c0_i32 : i32, i32
  }
}

</mosaic_0001>

<bundles_post_ra>
// kernel: realnvp_forward.1
= control target key start
LH: loop header
LB: loop body
LE: loop exit
PB: predicated region body
PF: predicated region fallthrough
CT: control target
= control target key end

     0   :  { %18 = vsyncpa [#allocation3], 0  ;;  %s1166_s0 = inlined_call_operand.vmem [shape: f32[8,8], index: 0, kind: input, shape index: {}]   ;;  %s1167_s1 = inlined_call_operand.hbm [shape: f32[8,64], index: 1, kind: input, shape index: {}]   ;;  %s1168_s2 = inlined_call_operand.vmem [shape: f32[1,64], index: 2, kind: input, shape index: {}]   ;;  %s1169_s3 = inlined_call_operand.vmem [shape: f32[64,64], index: 3, kind: input, shape index: {}]   ;;  %s1170_s4 = inlined_call_operand.vmem [shape: f32[1,64], index: 4, kind: input, shape index: {}]   ;;  %s1171_s5 = inlined_call_operand.vmem [shape: f32[64,8], index: 5, kind: input, shape index: {}]   ;;  %s1172_s6 = inlined_call_operand.vmem [shape: f32[1,8], index: 6, kind: input, shape index: {}]   ;;  %s1173_s7 = inlined_call_operand.vmem [shape: f32[4,64], index: 7, kind: input, shape index: {}]   ;;  %s1174_s8 = inlined_call_operand.vmem [shape: f32[1,64], index: 8, kind: input, shape index: {}]   ;;  %s1175_s9 = inlined_call_operand.vmem [shape: f32[64,64], index: 9, kind: input, shape index: {}]   ;;  %s1176_s10 = inlined_call_operand.vmem [shape: f32[1,64], index: 10, kind: input, shape index: {}]   ;;  %s1177_s11 = inlined_call_operand.vmem [shape: f32[64,8], index: 11, kind: input, shape index: {}]   ;;  %s1178_s12 = inlined_call_operand.vmem [shape: f32[1,8], index: 12, kind: input, shape index: {}]   ;;  %s1179_s13 = inlined_call_operand.hbm [shape: f32[8,8], index: 13, kind: output, shape index: {}]  }
   0x1   :  { %19 = vsyncpa [#allocation4], 0  ;;  %s902_s25 = smov [#allocation2]   ;;  %s854_s29 = scalar_lea.hbm %s1167_s1, 128 }
   0x2   :  { %s28_s26 = sshll.u32 %s902_s25, 4  ;;  %p855_p0 = scmp.ne.s32.totalorder %s1167_s1, %s854_s29  ;;  %s29_s26 = int_to_ptr.vmem [resolvable:$true] %s28_s26 }
   0x3   :  { %p858_p1 = scmp.lt.u32.totalorder %s854_s29, %s1167_s1 }
   0x5   :  { %p860_p2 = pnand %p858_p1, %p855_p0 }
   0x7   :  { %863 = shalt.err (!%p860_p2)
}
   0x8   :  { %s864_s17 = scalar_lea.vmem %s29_s26, 128  ;;  %p869_p4 = scmp.lt.s32.totalorder %s29_s26, %s29_s26 }
   0x9   :  { %p865_p3 = scmp.ne.s32.totalorder %s29_s26, %s864_s17  ;;  %p870_p5 = scmp.lt.s32.totalorder %s864_s17, %s864_s17 }
   0xb   :  { %p871_p6 = por %p870_p5, %p869_p4 }
   0xd   :  { %p872_p7 = pnand %p871_p6, %p865_p3 }
   0xf   :  { %875 = shalt.err (!%p872_p7)
}
  0x10   :  { %31 = dma.hbm_to_vmem [thread:$0]  %s1167_s1, 128, %s29_s26, [#allocation3]  }
  0x11   :  { %898 = dma.done.wait [#allocation3], 128  }
  0x12   :  { %899 = vsyncadd [#allocation3], 4294967168  ;;  %v903_v0 = vmov 0.0   ;;  %vm904_vm0 = vmmov 0   ;;  %vm66_vm1 = vcmask 64512   ;;  %v58_v1 = vld [vmem:[#allocation2] sm:$0xff] }
  0x13   :  { %701 = vmatprep.subr.mxu0 %v903_v0  ;;  %703 = vmatprep.mubr.msk.f32.mxu0 %vm904_vm0, %v903_v0  ;;  %v999_v2 = vld [vmem:[%s1166_s0] sm:$0xff]  ;;  %v148_v4 = vld [vmem:[%s1169_s3 + $0x8] sm:$0xff]  ;;  %v905_v6 = vmov 0.0|0.0   ;;  %v149_v7 = vld [vmem:[%s1169_s3 + $0x10] sm:$0xff]  ;;  %vm162_vm3 = vcmask 523264   ;;  %vm351_vm5 = vcmask 1043456  }
  0x14   :  { %722 = vmatprep.mubr.msk.f32.mxu1 %vm904_vm0, %v903_v0  ;;  %702 = vmatpush3.msra.mxu0 %v58_v1  ;;  %v147_v3 = vld [vmem:[%s1169_s3] sm:$0xff]  ;;  %v150_v8 = vld [vmem:[%s1169_s3 + $0x18] sm:$0xff]  ;;  %v152_v11 = vld [vmem:[%s1169_s3 + $0x28] sm:$0xff]  ;;  %s906_s20 = smov 124   ;;  %vm347_vm6 = vcmask 31744   ;;  %vm627_vm9 = vcmask 64544  }
  0x15   :  { %704 = vmatmul.mubr.msk.f32.vlgmr.msra.gmra.mrb[0].mxu0 %vm66_vm1, %v999_v2  ;;  %v788_v5 = vpack.c.bf16 %v148_v4, %v147_v3  ;;  %787 = vmatprep.subr.bf16.mxu1 %v905_v6  ;;  %v791_v9 = vpack.c.bf16 %v150_v8, %v149_v7  ;;  %v151_v10 = vld [vmem:[%s1169_s3 + $0x20] sm:$0xff]  ;;  %v153_v13 = vld [vmem:[%s1169_s3 + $0x30] sm:$0xff]  ;;  %v154_v14 = vld [vmem:[%s1169_s3 + $0x38] sm:$0xff] }
  0x16   :  { %741 = vmatprep.mubr.msk.f32.mxu0 %vm904_vm0, %v903_v0  ;;  %799 = vmatprep.subr.bf16.mxu0 %v905_v6  ;;  %v794_v12 = vpack.c.bf16 %v152_v11, %v151_v10  ;;  %v797_v15 = vpack.c.bf16 %v154_v14, %v153_v13  ;;  %v644_v16 = vld [vmem:[%s1168_s2] ss:$0 sm:$0xff]  ;;  %v244_v27 = vld [vmem:[%s1171_s5 + $0x8] sm:$0xff]  ;;  %v245_v29 = vld [vmem:[%s1171_s5 + $0x10] sm:$0xff] }
  0x17   :  { %789 = vmatpush3.bf16.msra.mxu1 %v788_v5  ;;  %v243_v26 = vld [vmem:[%s1171_s5] sm:$0xff]  ;;  %v246_v30 = vld [vmem:[%s1171_s5 + $0x18] sm:$0xff]  ;;  %v248_v33 = vld [vmem:[%s1171_s5 + $0x28] sm:$0xff] }
  0x18   :  { %790 = vmatprep.subr.bf16.mxu1 %v905_v6  ;;  %v800_v28 = vpack.c.bf16 %v244_v27, %v243_v26  ;;  %v803_v31 = vpack.c.bf16 %v246_v30, %v245_v29  ;;  %v247_v32 = vld [vmem:[%s1171_s5 + $0x20] sm:$0xff]  ;;  %v249_v35 = vld [vmem:[%s1171_s5 + $0x30] sm:$0xff]  ;;  %v250_v36 = vld [vmem:[%s1171_s5 + $0x38] sm:$0xff] }
  0x19   :  { %v806_v34 = vpack.c.bf16 %v248_v33, %v247_v32  ;;  %v809_v37 = vpack.c.bf16 %v250_v36, %v249_v35  ;;  %v647_v38 = vld [vmem:[%s1170_s4] ss:$0 sm:$0xff]  ;;  %v433_v59 = vld [vmem:[%s1175_s9 + $0x8] sm:$0xff]  ;;  %v434_v61 = vld [vmem:[%s1175_s9 + $0x10] sm:$0xff] }
  0x1a   :  { %801 = vmatpush3.bf16.msra.mxu0 %v800_v28  ;;  %v339_v48 = vld [vmem:[%s1173_s7] sm:$0xf]  ;;  %s907_s7 = smov 4   ;;  %v435_v62 = vld [vmem:[%s1175_s9 + $0x18] sm:$0xff]  ;;  %v437_v1 = vld [vmem:[%s1175_s9 + $0x28] sm:$0xff] }
  0x1b   :  { %792 = vmatpush3.bf16.msra.mxu1 %v791_v9  ;;  %802 = vmatprep.subr.bf16.mxu0 %v905_v6  ;;  %v650_v49 = vld [vmem:[%s1172_s6] ss:$0 sm:$0xff]  ;;  %v815_v63 = vpack.c.bf16 %v435_v62, %v434_v61  ;;  %v438_v4 = vld [vmem:[%s1175_s9 + $0x30] sm:$0xff]  ;;  %v439_v5 = vld [vmem:[%s1175_s9 + $0x38] sm:$0xff] }
  0x1c   :  { %793 = vmatprep.subr.bf16.mxu1 %v905_v6  ;;  %v432_v58 = vld [vmem:[%s1175_s9] sm:$0xff]  ;;  %v821_v7 = vpack.c.bf16 %v439_v5, %v438_v4  ;;  %v533_v27 = vld [vmem:[%s1177_s11 + $0x30] sm:$0xff]  ;;  %v534_v28 = vld [vmem:[%s1177_s11 + $0x38] sm:$0xff] }
  0x1d   :  { %v812_v60 = vpack.c.bf16 %v433_v59, %v432_v58  ;;  %v652_v8 = vld [vmem:[%s1174_s8] ss:$0 sm:$0xff]  ;;  %v833_v29 = vpack.c.bf16 %v534_v28, %v533_v27 }
  0x1e   :  { %804 = vmatpush3.bf16.msra.mxu0 %v803_v31  ;;  %v656_v30 = vld [vmem:[%s1176_s10] ss:$0 sm:$0xff]  ;;  %s908_s10 = smov [#allocation5]  }
  0x1f   :  { %795 = vmatpush3.bf16.msra.mxu1 %v794_v12  ;;  %805 = vmatprep.subr.bf16.mxu0 %v905_v6  ;;  %s635_s27 = sshll.u32 %s908_s10, 4  ;;  %s636_s27 = int_to_ptr.vmem [resolvable:$true] %s635_s27 }
  0x20   :  { %796 = vmatprep.subr.bf16.mxu1 %v905_v6  ;;  %p881_p9 = scmp.lt.s32.totalorder %s636_s27, %s636_s27 }
  0x22   :  { %807 = vmatpush3.bf16.msra.mxu0 %v806_v34 }
  0x23   :  { %798 = vmatpush3.bf16.msra.mxu1 %v797_v15  ;;  %808 = vmatprep.subr.bf16.mxu0 %v905_v6 }
  0x24   :  { %744 = vmatprep.subr.mxu1 %v903_v0 }
  0x26   :  { %810 = vmatpush3.bf16.msra.mxu0 %v809_v37 }
  0x27   :  { %811 = vmatprep.subr.bf16.mxu0 %v905_v6 }
  0xe8   :  { %v136_v17 = vpop.f32.mrb[0].mxu0 }
  0xe9   :  { %v137_v18 = vadd.f32 %v644_v16, %v136_v17  ;;  %v705_v19 = vpop.f32.mrb[1].mxu0 }
  0xea   :  { %v528_v19 = vld [vmem:[%s1177_s11 + $0x8] sm:$0xff] }
  0xeb   :  { %v141_v20 = vmul.f32 1.442695, %v137_v18  ;;  %vm140_vm2 = vcmp.gt.f32.partialorder %v137_v18, 0.0 }
  0xed   :  { %842 = vpow2.f32 %v141_v20 }
  0xf7   :  { %v843_v21 = vpop.eup %842 }
  0xf8   :  { %v646_v22 = vadd.f32 -1.0, %v843_v21  ;;  %v529_v21 = vld [vmem:[%s1177_s11 + $0x10] sm:$0xff] }
  0xfa   :  { %v144_v23 = vmul.f32 1.6732632, %v646_v22  ;;  %v530_v22 = vld [vmem:[%s1177_s11 + $0x18] sm:$0xff] }
  0xfc   :  { %v145_v24 = vsel %vm140_vm2, %v137_v18, %v144_v23  ;;  %v527_v18 = vld [vmem:[%s1177_s11] sm:$0xff]  ;;  %v827_v23 = vpack.c.bf16 %v530_v22, %v529_v21 }
  0xfd   :  { %v146_v25 = vmul.f32 1.050701, %v145_v24  ;;  %v824_v20 = vpack.c.bf16 %v528_v19, %v527_v18  ;;  %v531_v24 = vld [vmem:[%s1177_s11 + $0x20] sm:$0xff] }
  0xff   :  { %723 = vmatmul.mubr.msk.f32.vlgmr.msra.gmra.mrb[0].mxu1 %vm162_vm3, %v146_v25  ;;  %v532_v25 = vld [vmem:[%s1177_s11 + $0x28] sm:$0xff] }
 0x100   :  { %746 = vmatprep.mubr.msk.f32.mxu1 %vm904_vm0, %v903_v0  ;;  %745 = vmatpush3.msk.msra.mxu1 %vm351_vm5, %v339_v48  ;;  %v830_v26 = vpack.c.bf16 %v532_v25, %v531_v24 }
 0x101   :  { %823 = vmatprep.subr.bf16.mxu1 %v905_v6 }
 0x1d2   :  { %v232_v39 = vpop.f32.mrb[0].mxu1 }
 0x1d3   :  { %v233_v40 = vadd.f32 %v647_v38, %v232_v39  ;;  %v724_v41 = vpop.f32.mrb[1].mxu1  ;;  %v659_v39 = vld [vmem:[%s1178_s12] ss:$0 sm:$0xff]  ;;  %s876_s12 = scalar_lea.vmem %s636_s27, 128 }
 0x1d4   :  { %p877_p8 = scmp.ne.s32.totalorder %s636_s27, %s876_s12  ;;  %p882_p10 = scmp.lt.s32.totalorder %s876_s12, %s876_s12 }
 0x1d5   :  { %v237_v42 = vmul.f32 1.442695, %v233_v40  ;;  %vm236_vm4 = vcmp.gt.f32.partialorder %v233_v40, 0.0 }
 0x1d6   :  { %p883_p11 = por %p882_p10, %p881_p9 }
 0x1d7   :  { %844 = vpow2.f32 %v237_v42 }
 0x1d8   :  { %p884_p12 = pnand %p883_p11, %p877_p8 }
 0x1e1   :  { %v845_v43 = vpop.eup %844 }
 0x1e2   :  { %v649_v44 = vadd.f32 -1.0, %v845_v43 }
 0x1e4   :  { %v240_v45 = vmul.f32 1.6732632, %v649_v44 }
 0x1e6   :  { %v241_v46 = vsel %vm236_vm4, %v233_v40, %v240_v45 }
 0x1e7   :  { %v242_v47 = vmul.f32 1.050701, %v241_v46 }
 0x1e9   :  { %742 = vmatmul.mubr.msk.f32.vlgmr.msra.gmra.mrb[2].mxu0 %vm162_vm3, %v242_v47 }
 0x1ea   :  { %765 = vmatprep.mubr.msk.f32.mxu0 %vm904_vm0, %v903_v0  ;;  %813 = vmatpush3.bf16.msra.mxu0 %v812_v60 }
 0x1eb   :  { %814 = vmatprep.subr.bf16.mxu0 %v905_v6 }
 0x1ee   :  { %816 = vmatpush3.bf16.msra.mxu0 %v815_v63 }
 0x1ef   :  { %817 = vmatprep.subr.bf16.mxu0 %v905_v6 }
 0x2bc   :  { %v327_v50 = vpop.f32.mrb[2].mxu0 }
 0x2bd   :  { %v328_v51 = vadd.f32 %v650_v49, %v327_v50  ;;  %v743_v52 = vpop.f32.mrb[3].mxu0 }
 0x2bf   :  { %v331_v53 = vmul.f32 1.442695, %v328_v51 }
 0x2c1   :  { %846 = vpow2.f32 %v331_v53 }
 0x2cb   :  { %v847_v54 = vpop.eup %846 }
 0x2cc   :  { %v333_v55 = vmul.f32 %v847_v54, %v999_v2 }
 0x2ce   :  { %335 = vrot.lane.b32.xlu0 %v333_v55, %s906_s20 }
 0x340   :  { %v336_v56 = vpop.permute.xlu0 %335 }
 0x341   :  { %v338_v57 = vadd.f32 %v336_v56, %v328_v51 }
 0x343   :  { %624 = vrot.lane.b32.xlu1 %v338_v57, %s907_s7  ;;  %747 = vmatmul.mubr.msk.f32.vlgmr.msra.gmra.mrb[2].mxu1 %vm347_vm6, %v338_v57 }
 0x344   :  { %784 = vmatprep.mubr.msk.f32.mxu1 %vm904_vm0, %v903_v0  ;;  %v436_v0 = vld [vmem:[%s1175_s9 + $0x20] sm:$0xff]  ;;  %825 = vmatpush3.bf16.msra.mxu1 %v824_v20 }
 0x345   :  { %v818_v3 = vpack.c.bf16 %v437_v1, %v436_v0  ;;  %826 = vmatprep.subr.bf16.mxu1 %v905_v6 }
 0x347   :  { %819 = vmatpush3.bf16.msra.mxu0 %v818_v3 }
 0x348   :  { %820 = vmatprep.subr.bf16.mxu0 %v905_v6  ;;  %828 = vmatpush3.bf16.msra.mxu1 %v827_v23 }
 0x349   :  { %829 = vmatprep.subr.bf16.mxu1 %v905_v6 }
 0x34b   :  { %822 = vmatpush3.bf16.msra.mxu0 %v821_v7 }
 0x34c   :  { %831 = vmatpush3.bf16.msra.mxu1 %v830_v26 }
 0x34d   :  { %832 = vmatprep.subr.bf16.mxu1 %v905_v6 }
 0x350   :  { %834 = vmatpush3.bf16.msra.mxu1 %v833_v29 }
 0x3b5   :  { %v625_v48 = vpop.permute.xlu1 %624 }
 0x416   :  { %v421_v9 = vpop.f32.mrb[2].mxu1 }
 0x417   :  { %v422_v10 = vadd.f32 %v652_v8, %v421_v9  ;;  %v748_v11 = vpop.f32.mrb[3].mxu1 }
 0x419   :  { %v426_v12 = vmul.f32 1.442695, %v422_v10  ;;  %vm425_vm7 = vcmp.gt.f32.partialorder %v422_v10, 0.0 }
 0x41b   :  { %848 = vpow2.f32 %v426_v12 }
 0x425   :  { %v849_v13 = vpop.eup %848 }
 0x426   :  { %v655_v14 = vadd.f32 -1.0, %v849_v13 }
 0x428   :  { %v429_v15 = vmul.f32 1.6732632, %v655_v14 }
 0x42a   :  { %v430_v16 = vsel %vm425_vm7, %v422_v10, %v429_v15 }
 0x42b   :  { %v431_v17 = vmul.f32 1.050701, %v430_v16 }
 0x42d   :  { %766 = vmatmul.mubr.msk.f32.vlgmr.msra.gmra.mrb[4].mxu0 %vm162_vm3, %v431_v17 }
 0x500   :  { %v516_v31 = vpop.f32.mrb[4].mxu0 }
 0x501   :  { %v517_v32 = vadd.f32 %v656_v30, %v516_v31  ;;  %v767_v33 = vpop.f32.mrb[5].mxu0 }
 0x503   :  { %v521_v34 = vmul.f32 1.442695, %v517_v32  ;;  %vm520_vm8 = vcmp.gt.f32.partialorder %v517_v32, 0.0 }
 0x505   :  { %850 = vpow2.f32 %v521_v34 }
 0x50f   :  { %v851_v6 = vpop.eup %850 }
 0x510   :  { %v658_v35 = vadd.f32 -1.0, %v851_v6 }
 0x512   :  { %v524_v36 = vmul.f32 1.6732632, %v658_v35 }
 0x514   :  { %v525_v37 = vsel %vm520_vm8, %v517_v32, %v524_v36 }
 0x515   :  { %v526_v38 = vmul.f32 1.050701, %v525_v37 }
 0x517   :  { %785 = vmatmul.mubr.msk.f32.vlgmr.msra.gmra.mrb[4].mxu1 %vm162_vm3, %v526_v38 }
 0x5ea   :  { %v611_v40 = vpop.f32.mrb[4].mxu1 }
 0x5eb   :  { %v612_v41 = vadd.f32 %v659_v39, %v611_v40  ;;  %v786_v42 = vpop.f32.mrb[5].mxu1 }
 0x5ed   :  { %v615_v43 = vmul.f32 1.442695, %v612_v41 }
 0x5ef   :  { %852 = vpow2.f32 %v615_v43 }
 0x5f9   :  { %v853_v44 = vpop.eup %852 }
 0x5fa   :  { %618 = vrot.lane.b32.xlu0 %v853_v44, %s906_s20 }
 0x66c   :  { %v619_v45 = vpop.permute.xlu0 %618 }
 0x66d   :  { %v621_v46 = vmul.f32 %v619_v45, %v999_v2 }
 0x66f   :  { %v622_v47 = vadd.f32 %v621_v46, %v612_v41 }
 0x671   :  { %623 = vst.msk [vmem:[#allocation5] sm:$0xff] %vm347_vm6, %v622_v47 }
 0x672   :  { %628 = vst.msk [vmem:[#allocation5] sm:$0xff] %vm627_vm9, %v625_v48 }
 0x673   :  { %887 = shalt.err (!%p884_p12)
}
 0x674   :  { %s888_s29 = scalar_lea.hbm %s1179_s13, 128 }
 0x675   :  { %p889_p13 = scmp.ne.s32.totalorder %s1179_s13, %s888_s29  ;;  %p892_p0 = scmp.lt.u32.totalorder %s888_s29, %s1179_s13 }
 0x677   :  { %p894_p1 = pnand %p892_p0, %p889_p13 }
 0x679   :  { %897 = shalt.err (!%p894_p1)
}
 0x67a   :  { %638 = dma.vmem_to_hbm [thread:$0]  %s636_s27, 128, %s1179_s13, [#allocation4]  }
 0x67b   :  { %900 = dma.done.wait [#allocation4], 128  }
 0x67c   :  { %901 = vsyncadd [#allocation4], 4294967168 }
 0x67d   :  { %642 = vsyncpa [#allocation3], 1 }
 0x67e   :  { %643 = vsyncpa [#allocation4], 1 }

</bundles_post_ra>
